<compile_context>
chip_gen: v7x
topology: tpu7x:2x2x1
jax: 0.10.0
libtpu: 0.0.40
codegen_flags: <defaults>
</compile_context>

<pallas_src>
import functools

import jax
import jax.numpy as jnp
from jax import lax
from jax.experimental import pallas as pl
from jax.experimental.pallas import tpu as pltpu


def _kd_tile_kernel(s_ref, t_ref, lbl_ref, out_ref, *,
                    inv_temp, batch_size, block_rows):
    """One batch tile: emit an (8, 128) tile of partial sums (lane0=KL, lane1=NLL)."""
    i = pl.program_id(0)

    # bf16 inputs are upcast once here; all reductions/accumulation stay f32.
    s = s_ref[...].astype(jnp.float32)          # (TB, C) student logits
    t = t_ref[...].astype(jnp.float32)          # (TB, C) teacher logits
    lbl = lbl_ref[...]                          # (TB, 1) int32 labels

    inv_t = jnp.float32(inv_temp)

    # Per-row maxima on the RAW logits (max(x/T) == max(x)/T for T > 0), so one
    # shifted copy per input serves both the tempered and un-tempered paths.
    t_max = jnp.max(t, axis=-1, keepdims=True)            # (TB, 1)
    s_max = jnp.max(s, axis=-1, keepdims=True)            # (TB, 1)
    t_shift = t - t_max                                    # (TB, C)
    s_shift = s - s_max                                    # (TB, C)

    # Tempered exponentials: teacher softmax numerator / student tempered LSE.
    t_exp = jnp.exp(t_shift * inv_t)                       # (TB, C)
    s_exp_t = jnp.exp(s_shift * inv_t)                     # (TB, C)
    t_sum = jnp.sum(t_exp, axis=-1, keepdims=True)         # (TB, 1)
    s_sum_t = jnp.sum(s_exp_t, axis=-1, keepdims=True)     # (TB, 1)

    # Row-wise KL(teacher || student) with every per-row constant hoisted out
    # of the (TB, C) elementwise chain:
    #   sum_c p_c * (log p_c - log q_c)
    #     = (1/T) * sum_c t_exp * (t - s) / t_sum
    #       + (1/T) * (s_max - t_max) + log(s_sum_t) - log(t_sum)
    dot_ts = jnp.sum(t_exp * (t - s), axis=-1, keepdims=True)   # (TB, 1)
    row_kl = ((dot_ts * inv_t) / t_sum
              + inv_t * (s_max - t_max)
              + jnp.log(s_sum_t) - jnp.log(t_sum))               # (TB, 1)

    # Label cross-entropy on the un-tempered student logits (gather-free).
    # TODO(synk): PyTorch CrossEntropyLoss ignore_index=-100 semantics not
    # implemented (labels assumed in [0, C)).
    s_exp = jnp.exp(s_shift)                                # (TB, C)
    s_sum = jnp.sum(s_exp, axis=-1, keepdims=True)          # (TB, 1)
    cls_idx = lax.broadcasted_iota(jnp.int32, s.shape, 1)
    sel_shift = jnp.sum(jnp.where(cls_idx == lbl, s_shift, 0.0),
                        axis=-1, keepdims=True)             # (TB, 1) = s[lbl]-s_max
    row_nll = jnp.log(s_sum) - sel_shift                    # (TB, 1)

    # Mask rows past the real batch.  The last partial tile reads padded rows
    # from the tiled HBM layout; the select keeps any NaN/inf they produce out
    # of the partial sums (where() does not propagate the unselected branch).
    row_idx = lax.broadcasted_iota(jnp.int32, (block_rows, 1), 0) + i * block_rows
    valid = row_idx < batch_size
    kl_partial = jnp.sum(jnp.where(valid, row_kl, 0.0))
    nll_partial = jnp.sum(jnp.where(valid, row_nll, 0.0))

    # Lane-aligned partial output: lane 0 = KL sum, lane 1 = NLL sum.
    lane = lax.broadcasted_iota(jnp.int32, out_ref.shape, 1)
    out_ref[...] = jnp.where(
        lane == 0, kl_partial,
        jnp.where(lane == 1, nll_partial, 0.0)).astype(jnp.float32)


def _vmem_capacity_bytes():
    """Physical VMEM on the current chip (conservative fallback: 64 MiB, v7x)."""
    try:
        info = pltpu.get_tpu_info()
        cap = getattr(info, "vmem_capacity_bytes", None)
        if cap:
            return int(cap)
    except Exception:
        pass
    return 64 * 1024 * 1024


def distillation_loss(student_logits, teacher_logits, labels,
                      temperature=2.0, alpha=0.3, block_rows=None):
    """student_logits, teacher_logits: (B, C) float (f32 or bf16); labels: (B,) int."""
    b, c = student_logits.shape
    labels2d = labels.astype(jnp.int32).reshape(b, 1)

    itemsize = jnp.dtype(student_logits.dtype).itemsize
    sublane = {4: 8, 2: 16, 1: 32}.get(itemsize, 8)       # dtype-native sublane group
    b_pad = ((b + sublane - 1) // sublane) * sublane

    # Generation-aware VMEM plan: scoped limit = ~3/4 of physical VMEM
    # (48 MiB on 64-MiB v7x, 96 MiB on 128-MiB v5e/v6e).  The per-input batch
    # tile is sized so 2 logit inputs x 2 pipeline buffers plus the tile-sized
    # f32 temporaries inside the kernel stay well inside that limit.
    vmem_cap = _vmem_capacity_bytes()
    vmem_limit = int(min((vmem_cap * 3) // 4, 100 * 1024 * 1024))
    budget_bytes = max(512 * 1024, vmem_limit // 12)

    if block_rows is None:
        tb = budget_bytes // max(1, c * itemsize)
        tb = max(sublane, min(tb, 4096))
        tb = (tb // sublane) * sublane
    else:
        tb = max(sublane, (block_rows // sublane) * sublane)
    tb = min(tb, b_pad)

    # Megacore: guarantee >= 2 grid steps when the batch spans more than one
    # sublane group, so ("parallel",) shards the batch across the two v7x
    # TensorCores (no-op on single-core v5e/v6e).
    if block_rows is None and b_pad > sublane and (b + tb - 1) // tb < 2:
        half = (((b + 1) // 2 + sublane - 1) // sublane) * sublane
        tb = max(sublane, min(tb, half))

    num_tiles = (b + tb - 1) // tb

    # TODO(synk): for vocab-scale C (where even `sublane` rows of C exceed the
    # VMEM budget) add a C-axis grid dimension with online max/LSE accumulation
    # instead of requiring a full row of classes in VMEM.

    kernel = functools.partial(
        _kd_tile_kernel,
        inv_temp=1.0 / float(temperature),
        batch_size=b,
        block_rows=tb,
    )

    cost = pl.CostEstimate(
        flops=int(9 * b * c),
        transcendentals=int(3 * b * c),
        bytes_accessed=int(2 * b * c * itemsize + b * 4 + num_tiles * 8 * 128 * 4),
    )

    out = pl.pallas_call(
        kernel,
        out_shape=jax.ShapeDtypeStruct((num_tiles * 8, 128), jnp.float32),
        grid_spec=pltpu.PrefetchScalarGridSpec(
            num_scalar_prefetch=0,
            grid=(num_tiles,),
            in_specs=[
                pl.BlockSpec((tb, c), lambda i: (i, 0)),
                pl.BlockSpec((tb, c), lambda i: (i, 0)),
                pl.BlockSpec((tb, 1), lambda i: (i, 0)),
            ],
            out_specs=pl.BlockSpec((8, 128), lambda i: (i, 0)),
        ),
        compiler_params=pltpu.CompilerParams(
            dimension_semantics=("parallel",),
            vmem_limit_bytes=vmem_limit,
        ),
        cost_estimate=cost,
    )(student_logits, teacher_logits, labels2d)

    partials = out.reshape(num_tiles, 8, 128)[:, 0, :]     # one row per tile
    kl_sum = jnp.sum(partials[:, 0])
    nll_sum = jnp.sum(partials[:, 1])

    inv_b = jnp.float32(1.0 / b)
    soft_targets_loss = kl_sum * inv_b * jnp.float32(temperature) ** 2
    label_loss = nll_sum * inv_b
    a = jnp.float32(alpha)
    return a * soft_targets_loss + (jnp.float32(1.0) - a) * label_loss


def _reference_loss(student_logits, teacher_logits, labels,
                    temperature=2.0, alpha=0.3):
    # Pure-JAX reference mirroring the PyTorch forward.
    soft_targets = jax.nn.softmax(teacher_logits / temperature, axis=-1)
    soft_prob = jax.nn.log_softmax(student_logits / temperature, axis=-1)
    soft_targets_loss = (
        jnp.sum(soft_targets * (jnp.log(soft_targets) - soft_prob))
        / student_logits.shape[0]
    ) * temperature ** 2
    logp = jax.nn.log_softmax(student_logits, axis=-1)
    label_loss = -jnp.mean(jnp.take_along_axis(logp, labels[:, None], axis=-1))
    return alpha * soft_targets_loss + (1 - alpha) * label_loss


if __name__ == "__main__":
    key = jax.random.PRNGKey(0)
    k1, k2, k3 = jax.random.split(key, 3)

    # Small shapes; B deliberately not a multiple of the block to exercise the
    # multi-tile path + padded-row masking (block_rows=8 -> grid of 3 tiles).
    B, C = 20, 32
    student_logits = jax.random.normal(k1, (B, C), dtype=jnp.float32) * 2.0
    teacher_logits = jax.random.normal(k2, (B, C), dtype=jnp.float32) * 2.0
    labels = jax.random.randint(k3, (B,), 0, C, dtype=jnp.int32)

    ref = _reference_loss(student_logits, teacher_logits, labels,
                          temperature=2.0, alpha=0.3)

    loss = distillation_loss(student_logits, teacher_logits, labels,
                             temperature=2.0, alpha=0.3, block_rows=8)
    loss = jax.block_until_ready(loss)
    assert jnp.allclose(loss, ref, rtol=1e-5, atol=1e-5), (loss, ref)

    # Default block selection path (auto VMEM budget + megacore >=2-tile split).
    loss2 = jax.block_until_ready(
        distillation_loss(student_logits, teacher_logits, labels,
                          temperature=2.0, alpha=0.3))
    assert jnp.allclose(loss2, ref, rtol=1e-5, atol=1e-5), (loss2, ref)

    print("KERNEL_OK")
</pallas_src>

<mosaic_0001>
module attributes {stable_mosaic.version = 11 : i64} {
  func.func @_kd_tile_kernel(%arg0: i32, %arg1: memref<8x32xf32, #tpu.memory_space<vmem>>, %arg2: memref<8x32xf32, #tpu.memory_space<vmem>>, %arg3: memref<8x1xi32, #tpu.memory_space<vmem>>, %arg4: memref<8x128xf32, #tpu.memory_space<vmem>>) attributes {dimension_semantics = [#tpu.dimension_semantics<parallel>], iteration_bounds = array<i64: 3>, scalar_prefetch = 0 : i64, scratch_operands = 0 : i64, tpu.core_type = #tpu.core_type<tc>, window_params = [{transform_indices = @transform_0, window_bounds = array<i64: 8, 32>}, {transform_indices = @transform_1, window_bounds = array<i64: 8, 32>}, {transform_indices = @transform_2, window_bounds = array<i64: 8, 1>}, {transform_indices = @transform_3, window_bounds = array<i64: 8, 128>}]} {
    %c0 = arith.constant 0 : index
    %c0_0 = arith.constant 0 : index
    %0 = vector.load %arg1[%c0, %c0_0] : memref<8x32xf32, #tpu.memory_space<vmem>>, vector<8x32xf32>
    %c0_1 = arith.constant 0 : index
    %c0_2 = arith.constant 0 : index
    %1 = vector.load %arg2[%c0_1, %c0_2] : memref<8x32xf32, #tpu.memory_space<vmem>>, vector<8x32xf32>
    %c0_3 = arith.constant 0 : index
    %c0_4 = arith.constant 0 : index
    %2 = vector.load %arg3[%c0_3, %c0_4] : memref<8x1xi32, #tpu.memory_space<vmem>>, vector<8x1xi32>
    %cst = arith.constant dense<0xFF800000> : vector<8xf32>
    %3 = vector.multi_reduction <maximumf>, %1, %cst [1] : vector<8x32xf32> to vector<8xf32>
    %4 = vector.shape_cast %3 : vector<8xf32> to vector<8x1xf32>
    %cst_5 = arith.constant dense<0xFF800000> : vector<8xf32>
    %5 = vector.multi_reduction <maximumf>, %0, %cst_5 [1] : vector<8x32xf32> to vector<8xf32>
    %6 = vector.shape_cast %5 : vector<8xf32> to vector<8x1xf32>
    %7 = vector.broadcast %4 : vector<8x1xf32> to vector<8x32xf32>
    %8 = arith.subf %1, %7 : vector<8x32xf32>
    %9 = vector.broadcast %6 : vector<8x1xf32> to vector<8x32xf32>
    %10 = arith.subf %0, %9 : vector<8x32xf32>
    %cst_6 = arith.constant 5.000000e-01 : f32
    %11 = vector.broadcast %cst_6 : f32 to vector<8x32xf32>
    %12 = arith.mulf %8, %11 : vector<8x32xf32>
    %13 = math.exp %12 : vector<8x32xf32>
    %cst_7 = arith.constant 5.000000e-01 : f32
    %14 = vector.broadcast %cst_7 : f32 to vector<8x32xf32>
    %15 = arith.mulf %10, %14 : vector<8x32xf32>
    %16 = math.exp %15 : vector<8x32xf32>
    %cst_8 = arith.constant dense<0.000000e+00> : vector<8xf32>
    %17 = vector.multi_reduction <add>, %13, %cst_8 [1] : vector<8x32xf32> to vector<8xf32>
    %18 = vector.shape_cast %17 : vector<8xf32> to vector<8x1xf32>
    %cst_9 = arith.constant dense<0.000000e+00> : vector<8xf32>
    %19 = vector.multi_reduction <add>, %16, %cst_9 [1] : vector<8x32xf32> to vector<8xf32>
    %20 = vector.shape_cast %19 : vector<8xf32> to vector<8x1xf32>
    %21 = arith.subf %1, %0 : vector<8x32xf32>
    %22 = arith.mulf %13, %21 : vector<8x32xf32>
    %cst_10 = arith.constant dense<0.000000e+00> : vector<8xf32>
    %23 = vector.multi_reduction <add>, %22, %cst_10 [1] : vector<8x32xf32> to vector<8xf32>
    %24 = vector.shape_cast %23 : vector<8xf32> to vector<8x1xf32>
    %cst_11 = arith.constant 5.000000e-01 : f32
    %25 = vector.broadcast %cst_11 : f32 to vector<8x1xf32>
    %26 = arith.mulf %24, %25 : vector<8x1xf32>
    %27 = arith.divf %26, %18 : vector<8x1xf32>
    %28 = arith.subf %6, %4 : vector<8x1xf32>
    %cst_12 = arith.constant 5.000000e-01 : f32
    %29 = vector.broadcast %cst_12 : f32 to vector<8x1xf32>
    %30 = arith.mulf %29, %28 : vector<8x1xf32>
    %31 = arith.addf %27, %30 : vector<8x1xf32>
    %32 = math.log %20 : vector<8x1xf32>
    %33 = arith.addf %31, %32 : vector<8x1xf32>
    %34 = math.log %18 : vector<8x1xf32>
    %35 = arith.subf %33, %34 : vector<8x1xf32>
    %36 = math.exp %10 : vector<8x32xf32>
    %cst_13 = arith.constant dense<0.000000e+00> : vector<8xf32>
    %37 = vector.multi_reduction <add>, %36, %cst_13 [1] : vector<8x32xf32> to vector<8xf32>
    %38 = vector.shape_cast %37 : vector<8xf32> to vector<8x1xf32>
    %39 = tpu.iota {dimensions = array<i32: 1>} : vector<8x32xi32>
    %40 = vector.broadcast %2 : vector<8x1xi32> to vector<8x32xi32>
    %41 = arith.cmpi eq, %39, %40 : vector<8x32xi32>
    %cst_14 = arith.constant 0.000000e+00 : f32
    %42 = vector.broadcast %cst_14 : f32 to vector<8x32xf32>
    %43 = arith.select %41, %10, %42 : vector<8x32xi1>, vector<8x32xf32>
    %cst_15 = arith.constant dense<0.000000e+00> : vector<8xf32>
    %44 = vector.multi_reduction <add>, %43, %cst_15 [1] : vector<8x32xf32> to vector<8xf32>
    %45 = vector.shape_cast %44 : vector<8xf32> to vector<8x1xf32>
    %46 = math.log %38 : vector<8x1xf32>
    %47 = arith.subf %46, %45 : vector<8x1xf32>
    %48 = tpu.iota {dimensions = array<i32: 0>} : vector<8x1xi32>
    %c8_i32 = arith.constant 8 : i32
    %49 = arith.muli %arg0, %c8_i32 : i32
    %50 = vector.broadcast %49 : i32 to vector<8x1xi32>
    %51 = arith.addi %48, %50 : vector<8x1xi32>
    %c20_i32 = arith.constant 20 : i32
    %52 = vector.broadcast %c20_i32 : i32 to vector<8x1xi32>
    %53 = arith.cmpi slt, %51, %52 : vector<8x1xi32>
    %cst_16 = arith.constant 0.000000e+00 : f32
    %54 = vector.broadcast %cst_16 : f32 to vector<8x1xf32>
    %55 = arith.select %53, %35, %54 : vector<8x1xi1>, vector<8x1xf32>
    %56 = vector.shape_cast %55 : vector<8x1xf32> to vector<1x8x1xf32>
    %cst_17 = arith.constant dense<0.000000e+00> : vector<1xf32>
    %57 = vector.multi_reduction <add>, %56, %cst_17 [1, 2] : vector<1x8x1xf32> to vector<1xf32>
    %58 = vector.shape_cast %57 : vector<1xf32> to vector<1x1x1xf32>
    %59 = vector.extract %58[0, 0, 0] : f32 from vector<1x1x1xf32>
    %cst_18 = arith.constant 0.000000e+00 : f32
    %60 = vector.broadcast %cst_18 : f32 to vector<8x1xf32>
    %61 = arith.select %53, %47, %60 : vector<8x1xi1>, vector<8x1xf32>
    %62 = vector.shape_cast %61 : vector<8x1xf32> to vector<1x8x1xf32>
    %cst_19 = arith.constant dense<0.000000e+00> : vector<1xf32>
    %63 = vector.multi_reduction <add>, %62, %cst_19 [1, 2] : vector<1x8x1xf32> to vector<1xf32>
    %64 = vector.shape_cast %63 : vector<1xf32> to vector<1x1x1xf32>
    %65 = vector.extract %64[0, 0, 0] : f32 from vector<1x1x1xf32>
    %66 = tpu.iota {dimensions = array<i32: 1>} : vector<8x128xi32>
    %c0_i32 = arith.constant 0 : i32
    %67 = vector.broadcast %c0_i32 : i32 to vector<8x128xi32>
    %68 = arith.cmpi eq, %66, %67 : vector<8x128xi32>
    %c1_i32 = arith.constant 1 : i32
    %69 = vector.broadcast %c1_i32 : i32 to vector<8x128xi32>
    %70 = arith.cmpi eq, %66, %69 : vector<8x128xi32>
    %cst_20 = arith.constant 0.000000e+00 : f32
    %71 = vector.broadcast %65 : f32 to vector<8x128xf32>
    %72 = vector.broadcast %cst_20 : f32 to vector<8x128xf32>
    %73 = arith.select %70, %71, %72 : vector<8x128xi1>, vector<8x128xf32>
    %74 = vector.broadcast %59 : f32 to vector<8x128xf32>
    %75 = arith.select %68, %74, %73 : vector<8x128xi1>, vector<8x128xf32>
    %c0_21 = arith.constant 0 : index
    %c0_22 = arith.constant 0 : index
    %76 = vector.load %arg4[%c0_21, %c0_22] : memref<8x128xf32, #tpu.memory_space<vmem>>, vector<8x128xf32>
    tpu.vector_store %arg4[%c0_21, %c0_22], %75 {strides = array<i32>} : memref<8x128xf32, #tpu.memory_space<vmem>>, vector<8x128xf32>,
    return
  }
  func.func @transform_0(%arg0: i32) -> (i32, i32) {
    %c0_i32 = arith.constant 0 : i32
    %c0_i32_0 = arith.constant 0 : i32
    return %arg0, %c0_i32 : i32, i32
  }
  func.func @transform_1(%arg0: i32) -> (i32, i32) {
    %c0_i32 = arith.constant 0 : i32
    %c0_i32_0 = arith.constant 0 : i32
    return %arg0, %c0_i32 : i32, i32
  }
  func.func @transform_2(%arg0: i32) -> (i32, i32) {
    %c0_i32 = arith.constant 0 : i32
    %c0_i32_0 = arith.constant 0 : i32
    return %arg0, %c0_i32 : i32, i32
  }
  func.func @transform_3(%arg0: i32) -> (i32, i32) {
    %c0_i32 = arith.constant 0 : i32
    %c0_i32_0 = arith.constant 0 : i32
    return %arg0, %c0_i32 : i32, i32
  }
}

</mosaic_0001>

<bundles_post_ra>
// kernel: tpu_custom_call.1
= control target key start
LH: loop header
LB: loop body
LE: loop exit
PB: predicated region body
PF: predicated region fallthrough
CT: control target
= control target key end

     0   :  { %8 = vsyncpa [#allocation3], 0  ;;  %s810_s0 = inlined_call_operand.vmem [shape: f32[20,32], index: 0, kind: input, shape index: {}]   ;;  %s811_s1 = inlined_call_operand.hbm [shape: f32[20,32], index: 1, kind: input, shape index: {}]   ;;  %s812_s2 = inlined_call_operand.vmem [shape: s32[20,1], index: 2, kind: input, shape index: {}]   ;;  %s813_s3 = inlined_call_operand.hbm [shape: f32[24,128], index: 3, kind: output, shape index: {}]  }
   0x1   :  { %10 = vsyncpa [#allocation3 + $0x1], 0 }
   0x2   :  { %11 = vsyncpa [#allocation4], 0 }
   0x3   :  { %13 = vsyncpa [#allocation4 + $0x1], 0  ;;  %s626_s12 = smov 0   ;;  %s628_s13 = smov 0  }
   0x4   :  { %s630_s14 = smov 0   ;;  %s632_s15 = smov 0  }
   0x5 LB: > { %s647_s16 = sadd.s32 4294967295, %s601_s15   ;;  %s423_s17 = sadd.s32 4294967294, %s601_s15   ;;  %s601_s15 = sphi %s632_s15, %s827_s15   ;;  %s597_s14 = sphi %s630_s14, %s826_s14   ;;  %s593_s13 = sphi %s628_s13, %s825_s13   ;;  %s589_s12 = sphi %s626_s12, %s824_s12  }
   0x6   : > { %s651_s18 = sadd.s32 1, %s601_s15   ;;  %s52_s19 = sadd.s32 1, %s597_s14 }
   0x7   : > { %s49_s20 = ssub.s32 %s601_s15, %s651_s18  ;;  %p59_p0 = scmp.ne.s32.totalorder %s597_s14, %s593_s13 }
   0x8   : > { %p50_p1 = scmp.eq.s32.totalorder %s49_s20, 0  ;;  %p60_p2 = scmp.eq.s32.totalorder %s601_s15, 0 }
   0x9   : > { %p65_p3 = scmp.ne.s32.totalorder %s593_s13, %s589_s12  ;;  %p66_p4 = scmp.eq.s32.totalorder %s647_s16, 0 }
   0xa   : > { %s663_s21 = scalar_select %p50_p1, %s597_s14, %s52_s19  }
   0xb   : > { %p665_p5 = por %p60_p2, %p59_p0  ;;  %p669_p6 = por %p66_p4, %p65_p3 }
   0xc   : > { %p115_p7 = scmp.eq.s32.totalorder %s647_s16, 2  ;;  %p121_p8 = scmp.eq.s32.totalorder %s423_s17, 2 }
   0xd   : > { %p454_p9 = scmp.lt.s32.totalorder %s601_s15, 3  ;;  %s148_s26 = sand.u32 1, %s597_s14  }
   0xe   : > { %p675_p10 = por %p115_p7, %p59_p0  ;;  %p679_p11 = por %p121_p8, %p65_p3 }
   0xf   : > { %s427_s27 = sshll.u32 %s601_s15, 7  ;;  %s426_s28 = sshll.u32 %s148_s26, 3 }
  0x10   : > { %s817_s24 = scalar_select %p675_p10, 1, 0 }
  0x11   : > { %s818_s25 = scalar_select %p679_p11, 1, 0 }
  0x12   : > { %s688_s4 = scalar_lea.hbm %s811_s1, %s427_s27  ;;  %s152_s5 = scalar_lea.vmem [#allocation2], %s426_s28 }
  0x13   : > { %s159_s6 = sshll.u32 %s152_s5, 4  ;;  %p692_p12 = pnand %p454_p9, %p665_p5  ;;  %s696_s6 = int_to_ptr.vmem [resolvable:$true] %s159_s6 }
  0x14   : > { %s149_s8 = scalar_lea.sflag [#allocation3], %s148_s26  ;;  %s505_s9 = scalar_lea.hbm %s688_s4, 128 }
  0x15   : > { %p506_p1 = scmp.ne.s32.totalorder %s688_s4, %s505_s9  ;;  %p507_p2 = pneg %p692_p12 }
  0x16   : > { %s510_s17 = scalar_lea.hbm %s811_s1, 384  ;;  %p511_p5 = scmp.lt.u32.totalorder %s688_s4, %s811_s1 }
  0x17   : > { %p508_p3 = pnand %p507_p2, %p506_p1  ;;  %p512_p7 = scmp.lt.u32.totalorder %s510_s17, %s505_s9 }
  0x18   : > { %p514_p9 = scmp.lt.u32.totalorder %s505_s9, %s688_s4 }
  0x19   : > { %p509_p4 = pneg %p508_p3  ;;  %p513_p8 = por %p512_p7, %p511_p5 }
  0x1b   : > { %p515_p13 = por %p514_p9, %p513_p8 }
  0x1d   : > { %p516_p0 = pnand %p515_p13, %p509_p4 }
  0x1f   : > { %519 = shalt.err (!%p516_p0)
}
  0x20   : > { %s520_s22 = scalar_lea.vmem %s696_s6, 128  ;;  %s603_s26 = smov [#allocation2]  }
  0x21   : > { %p521_p1 = scmp.ne.s32.totalorder %s696_s6, %s520_s22  ;;  %s525_s27 = sshll.u32 %s603_s26, 4  ;;  %s526_s27 = int_to_ptr.vmem [resolvable:$false] %s525_s27 }
  0x22   : > { %s527_s28 = scalar_lea.vmem %s526_s27, 256  ;;  %p528_p10 = scmp.lt.s32.totalorder %s696_s6, %s526_s27 }
  0x23   : > { %p523_p3 = pnand %p521_p1, %p507_p2  ;;  %p529_p5 = scmp.lt.s32.totalorder %s527_s28, %s520_s22 }
  0x25   : > { %p524_p11 = pneg %p523_p3  ;;  %p530_p7 = por %p529_p5, %p528_p10 }
  0x27   : > { %p531_p8 = pnand %p530_p7, %p524_p11 }
  0x29   : > { %534 = shalt.err (!%p531_p8)
}
  0x2a   : > { %449 = dma.hbm_to_vmem [thread:$0]  (!%p692_p12), %s688_s4, 128, %s696_s6, %s149_s8  }
  0x2b   : > { %p820_p13 = scmp.lt.s32.totalorder %s601_s15, 4  ;;  %p821_p0 = scmp.ge.s32.totalorder %s601_s15, 1 }
  0x2d   : > { %p172_p2 = pnand %p821_p0, %p820_p13 }
  0x2e   : > { %s730_s29 = sand.u32 (!%p172_p2), 1, %s593_s13  }
  0x2f   : > { %175 = sbr.rel (%p172_p2) target bundleno = 610 (0x262), region = 32  ;;  %s429_s30 = sshll.u32 (!%p172_p2), %s730_s29, 3 }
  0x30   : > { %s178_s5 = scalar_lea.sflag (!%p172_p2), [#allocation3], %s730_s29  ;;  %s181_s7 = scalar_lea.vmem (!%p172_p2), [#allocation2], %s429_s30 }
  0x36   : > { %580 = dma.done.wait (%p669_p6), %s178_s5, 128  }
  0x37   : > { %582 = vsyncadd (%p669_p6), %s178_s5, 4294967168  ;;  %p212_p10 = scmp.lt.s32.totalorder %s647_s16, 2  ;;  %v604_v0 = vmov 0   ;;  %vm223_vm0 = vcmask 261120   ;;  %v221_v1 = vld [vmem:[%s181_s7] sm:$0xff]  ;;  %v266_v17 = vlaneseq  ;;  %s433_s23 = sshll.u32 %s647_s16, 3 }
  0x38   : > { %489 = vset.pattern.permute.xlu1 %v604_v0  ;;  %490 = vset.pattern.permute.xlu0 %v604_v0  ;;  %v224_v4 = vsel %vm223_vm0, %v221_v1, -inf  ;;  %v282_v36 = vstv %s433_s23  ;;  %vm286_vm3 = vcmask 7168   ;;  %s435_s20 = sshll.u32 %s647_s16, 7  ;;  %s211_s26 = scalar_lea.vmem [#allocation5], %s429_s30 }
  0x39   : > { %s213_s4 = scalar_select %p212_p10, %s647_s16, 2  ;;  %225 = vmax.xlane.f32.xlu0 %v224_v4  ;;  %v752_v22 = vand.u32 127, %v266_v17  ;;  %v280_v34 = vshrl.u32 %v266_v17, 7 }
  0x3a   : > { %s329_s27 = sshll.u32 %s211_s26, 4  ;;  %s316_s16 = scalar_lea.sflag [#allocation4], %s730_s29  ;;  %s769_s27 = int_to_ptr.vmem [resolvable:$true] %s329_s27 }
  0x3b   : > { %s431_s6 = sshll.u32 %s213_s4, 3  ;;  %v283_v43 = vadd.s32 %v282_v36, %v280_v34  ;;  %vm309_vm4 = vcmp.eq.s32.totalorder %v752_v22, 1  ;;  %vm308_vm5 = vcmp.eq.s32.totalorder %v752_v22, 0  ;;  %s767_s4 = scalar_lea.hbm %s813_s3, %s435_s20 }
  0x3c   : > { %s215_s10 = scalar_lea.vmem %s810_s0, %s431_s6  ;;  %s219_s19 = scalar_lea.vmem %s812_s2, %s431_s6 }
  0x3d   : > { %v220_v2 = vld [vmem:[%s215_s10] sm:$0xff]  ;;  %vm284_vm2 = vcmp.lt.s32.totalorder %v283_v43, 20  ;;  %s535_s30 = scalar_lea.vmem %s769_s27, 128  ;;  %p822_p11 = scmp.ne.s32.totalorder %s817_s24, 0 }
  0x3e   : > { %v222_v3 = vld [vmem:[%s219_s19] sm:$0xff]  ;;  %v227_v5 = vsel %vm223_vm0, %v220_v2, -inf  ;;  %v244_v20 = vsub.f32 %v221_v1, %v220_v2  ;;  %p536_p6 = scmp.ne.s32.totalorder %s769_s27, %s535_s30  ;;  %s605_s6 = smov [#allocation5]  }
  0x3f   : > { %269 = vperm.xlu1 %489, %v222_v3   ;;  %228 = vmax.xlane.f32.xlu0 %v227_v5  ;;  %s539_s8 = sshll.u32 %s605_s6, 4  ;;  %s540_s8 = int_to_ptr.vmem [resolvable:$false] %s539_s8 }
  0x40   : > { %p537_p12 = pnand %p536_p6, %p822_p11  ;;  %s541_s9 = scalar_lea.vmem %s540_s8, 256 }
  0x41   : > { %p542_p9 = scmp.lt.s32.totalorder %s769_s27, %s540_s8  ;;  %p543_p1 = scmp.lt.s32.totalorder %s541_s9, %s535_s30 }
  0x42   : > { %p538_p4 = pneg %p537_p12 }
  0x43   : > { %p544_p3 = por %p543_p1, %p542_p9 }
  0x45   : > { %p545_p5 = pnand %p544_p3, %p538_p4 }
  0xbe   : > { %v270_v23 = vpop.permute.xlu1 %269 }
  0xbf   : > { %vm271_vm1 = vcmp.eq.s32.totalorder %v752_v22, %v270_v23 }
  0xc6   : > { %v226_v6 = vpop.xlane.xlu0 %225 }
  0xc7   : > { %v230_v7 = vsub.f32 %v221_v1, %v226_v6 }
  0xc9   : > { %v232_v8 = vmul.f32 0.5, %v230_v7 }
  0xcb   : > { %v233_v10 = vmul.f32 1.442695, %v232_v8 }
  0xcc   : > { %v229_v9 = vpop.xlane.xlu0 %228 }
  0xcd   : > { %v231_v11 = vsub.f32 %v220_v2, %v229_v9  ;;  %491 = vpow2.f32 %v233_v10  ;;  %v252_v32 = vsub.f32 %v229_v9, %v226_v6 }
  0xcf   : > { %v235_v12 = vmul.f32 0.5, %v231_v11  ;;  %v261_v14 = vmul.f32 1.442695, %v231_v11  ;;  %v272_v27 = vsel %vm271_vm1, %v231_v11, 0.0  ;;  %v253_v39 = vmul.f32 0.5, %v252_v32 }
  0xd0   : > { %v273_v28 = vsel %vm223_vm0, %v272_v27, 0.0 }
  0xd1   : > { %v236_v13 = vmul.f32 1.442695, %v235_v12 }
  0xd3   : > { %493 = vpow2.f32 %v236_v13 }
  0xd4   : > { %495 = vpow2.f32 %v261_v14 }
  0xd7   : > { %v492_v15 = vpop.eup %491 }
  0xd8   : > { %v238_v16 = vsel %vm223_vm0, %v492_v15, 0.0  ;;  %v245_v25 = vmul.f32 %v492_v15, %v244_v20 }
  0xd9   : > { %239 = vadd.xlane.f32.xlu1 %v238_v16 }
  0xda   : > { %v246_v26 = vsel %vm223_vm0, %v245_v25, 0.0 }
  0xdd   : > { %v494_v18 = vpop.eup %493 }
  0xde   : > { %v241_v19 = vsel %vm223_vm0, %v494_v18, 0.0  ;;  %v496_v21 = vpop.eup %495 }
  0xdf   : > { %242 = vadd.xlane.f32.xlu0 %v241_v19  ;;  %v263_v24 = vsel %vm223_vm0, %v496_v21, 0.0 }
  0xe3   : > { %264 = vadd.xlane.f32.xlu0 %v263_v24 }
  0xe7   : > { %247 = vadd.xlane.f32.xlu0 %v246_v26 }
  0xeb   : > { %274 = vadd.xlane.f32.xlu0 %v273_v28 }
 0x166   : > { %v240_v29 = vpop.xlane.xlu1 %239 }
 0x167   : > { %497 = vrcp.f32 %v240_v29 }
 0x16c   : > { %v243_v30 = vpop.xlane.xlu0 %242 }
 0x16d   : > { %499 = vlog2.f32 %v243_v30 }
 0x16e   : > { %501 = vlog2.f32 %v240_v29 }
 0x170   : > { %v265_v31 = vpop.xlane.xlu0 %264 }
 0x171   : > { %503 = vlog2.f32 %v265_v31  ;;  %v498_v37 = vpop.eup %497 }
 0x174   : > { %v248_v33 = vpop.xlane.xlu0 %247 }
 0x175   : > { %v249_v35 = vmul.f32 0.5, %v248_v33 }
 0x177   : > { %v500_v38 = vpop.eup %499  ;;  %v251_v40 = vmul.f32 %v498_v37, %v249_v35 }
 0x178   : > { %v502_v41 = vpop.eup %501  ;;  %v256_v42 = vmul.f32 0.6931472, %v500_v38  ;;  %v275_v49 = vpop.xlane.xlu0 %274 }
 0x179   : > { %v254_v44 = vadd.f32 %v253_v39, %v251_v40  ;;  %v259_v46 = vmul.f32 0.6931472, %v502_v41 }
 0x17b   : > { %v504_v45 = vpop.eup %503  ;;  %v257_v47 = vadd.f32 %v256_v42, %v254_v44 }
 0x17c   : > { %v277_v48 = vmul.f32 0.6931472, %v504_v45 }
 0x17d   : > { %v260_v50 = vsub.f32 %v257_v47, %v259_v46 }
 0x17e   : > { %v278_v51 = vsub.f32 %v277_v48, %v275_v49 }
 0x17f   : > { %v285_v52 = vsel %vm284_vm2, %v260_v50, 0.0 }
 0x180   : > { %v287_v53 = vsel %vm286_vm3, %v285_v52, 0.0  ;;  %v297_v54 = vsel %vm284_vm2, %v278_v51, 0.0 }
 0x181   : > { %288 = vadd.xlane.f32.xlu0 %v287_v53  ;;  %v298_v55 = vsel %vm286_vm3, %v297_v54, 0.0 }
 0x185   : > { %299 = vadd.xlane.f32.xlu0 %v298_v55 }
 0x20e   : > { %v289_v56 = vpop.xlane.xlu0 %288 }
 0x20f   : > { %v290_v57 = vrot.slane %v289_v56, 4 }
 0x211   : > { %v291_v58 = vadd.f32 %v290_v57, %v289_v56 }
 0x212   : > { %v300_v59 = vpop.xlane.xlu0 %299 }
 0x213   : > { %v292_v60 = vrot.slane %v291_v58, 2  ;;  %v301_v61 = vrot.slane %v300_v59, 4 }
 0x215   : > { %v302_v62 = vadd.f32 %v301_v61, %v300_v59  ;;  %v293_v63 = vadd.f32 %v292_v60, %v291_v58 }
 0x217   : > { %v303_v0 = vrot.slane %v302_v62, 2  ;;  %v294_v1 = vrot.slane %v293_v63, 1 }
 0x219   : > { %v304_v2 = vadd.f32 %v303_v0, %v302_v62  ;;  %v295_v3 = vadd.f32 %v294_v1, %v293_v63 }
 0x21b   : > { %438 = vpush %v295_v3  ;;  %v305_v4 = vrot.slane %v304_v2, 1 }
 0x21d   : > { %v306_v5 = vadd.f32 %v305_v4, %v304_v2 }
 0x21f   : > { %440 = vpush %v306_v5 }
 0x24c   : > { %s439_s22 = spop %438 }
 0x24d   : > { %v312_v7 = vstv %s439_s22 }
 0x250   : > { %s441_s28 = spop %440 }
 0x251   : > { %v310_v6 = vstv %s441_s28 }
 0x252   : > { %v311_v8 = vsel %vm309_vm4, %v310_v6, 0.0 }
 0x253   : > { %v313_v9 = vsel %vm308_vm5, %v312_v7, %v311_v8 }
 0x254   : > { %314 = vst [vmem:[%s211_s26] sm:$0xff] %v313_v9 }
 0x255   : > { %548 = shalt.err (!%p545_p5)
}
 0x256   : > { %s549_s29 = scalar_lea.hbm %s767_s4, 128  ;;  %s553_s17 = scalar_lea.hbm %s813_s3, 384 }
 0x257   : > { %p550_p7 = scmp.ne.s32.totalorder %s767_s4, %s549_s29  ;;  %p554_p0 = scmp.lt.u32.totalorder %s767_s4, %s813_s3 }
 0x258   : > { %p555_p2 = scmp.lt.u32.totalorder %s553_s17, %s549_s29  ;;  %p557_p6 = scmp.lt.u32.totalorder %s549_s29, %s767_s4 }
 0x259   : > { %p551_p8 = pnand %p550_p7, %p822_p11 }
 0x25a   : > { %p556_p10 = por %p555_p2, %p554_p0 }
 0x25b   : > { %p552_p13 = pneg %p551_p8 }
 0x25c   : > { %p558_p12 = por %p557_p6, %p556_p10 }
 0x25e   : > { %p559_p4 = pnand %p558_p12, %p552_p13 }
 0x260   : > { %562 = shalt.err (!%p559_p4)
}
 0x261   : > { %444 = dma.vmem_to_hbm [thread:$0]  (%p822_p11), %s769_s27, 128, %s767_s4, %s316_s16  }
 0x262 PF: > { %p455_p9 = scmp.ge.s32.totalorder %s601_s15, 2  ;;  %s341_s20 = sand.u32 1, %s589_s12  }
 0x263   : > { %p823_p1 = scmp.ne.s32.totalorder %s818_s25, 0  ;;  %s342_s22 = scalar_lea.sflag [#allocation4], %s341_s20 }
 0x265   : > { %p451_p3 = pnand %p455_p9, %p823_p1 }
 0x267   : > { %584 = dma.done.wait (!%p451_p3), %s342_s22, 128  }
 0x268   : > { %586 = vsyncadd (!%p451_p3), %s342_s22, 4294967168  ;;  %p16_p5 = scmp.ge.s32.totalorder %s651_s18, 5   ;;  %s824_s12 = smov %s593_s13 }
 0x269   : > { %s825_s13 = smov %s597_s14  ;;  %s826_s14 = smov %s663_s21 }
 0x26a   : > { %s827_s15 = smov %s651_s18  ;;  %18 = sbr.rel (!%p16_p5) target bundleno = 5 (0x5), region = 83 }
 0x271   :  { %347 = vsyncpa [#allocation3], 1 }
 0x272   :  { %349 = vsyncpa [#allocation3 + $0x1], 1 }
 0x273   :  { %350 = vsyncpa [#allocation4], 1 }
 0x274   :  { %352 = vsyncpa [#allocation4 + $0x1], 1 }

</bundles_post_ra>
